<compile_context>
chip_gen: v7x
topology: tpu7x:2x2x1
jax: 0.10.0
libtpu: 0.0.40
codegen_flags: <defaults>
</compile_context>

<pallas_src>
import math

import numpy as np
import jax
import jax.numpy as jnp
from jax.experimental import pallas as pl
from jax.experimental.pallas import tpu as pltpu

# ---- problem sizes (small, consistent with the module) ----
B = 2            # batch
N = 8            # set size (sequence length)
D_IN = 32        # input_size
SIZE = 32        # output_size (attention size)
N_HEADS = 4
HEAD = SIZE // N_HEADS       # 8
TOK = B * N                  # 16 query rows (all batches flattened)
WIDE = N_HEADS * TOK         # 64 wide key columns, head-major: g = h*TOK + b*N + m

NEG_INF = -1.0e30

# ---- packed parameter-slab row offsets (sublane-tile aligned) ----
_QKV_B_ROW = D_IN            # row 32 of qkv slab = fused bias
_QKV_SLAB_ROWS = 40          # rows 33..39 zero pad
_O_B_ROW = SIZE              # row 32 of o slab  = fc_o bias
_HEAD_MASK_ROW = 40          # rows 40..103      = head-block mask
_O_SLAB_ROWS = _HEAD_MASK_ROW + WIDE   # 104


def sab_kernel(x_ref, qkv_slab_ref, o_slab_ref, batch_bias_ref, out_ref):
    x = x_ref[...]                                                   # (TOK, D_IN)

    wqkv = qkv_slab_ref[0:D_IN, :]                                   # (D_IN, 3*SIZE), K cols pre-scaled
    bqkv = qkv_slab_ref[_QKV_B_ROW:_QKV_B_ROW + 1, :]                # (1, 3*SIZE)
    wo = o_slab_ref[0:SIZE, :]                                       # (SIZE, SIZE)
    bo = o_slab_ref[_O_B_ROW:_O_B_ROW + 1, :]                        # (1, SIZE)
    head_mask = o_slab_ref[_HEAD_MASK_ROW:_HEAD_MASK_ROW + WIDE, :]  # (WIDE, SIZE) 0/1
    batch_bias = batch_bias_ref[...]                                 # (TOK, WIDE) 0 / -1e30

    # Fused Q/K/V projection: one MXU push.  K columns already carry 1/sqrt(SIZE).
    qkv = jnp.dot(x, wqkv, preferred_element_type=jnp.float32) + bqkv   # (TOK, 3*SIZE)
    q = qkv[:, 0 * SIZE:1 * SIZE]
    k = qkv[:, 1 * SIZE:2 * SIZE]
    v = qkv[:, 2 * SIZE:3 * SIZE]

    # Replicate K/V once per head along the wide axis (head-major) and zero the
    # features outside each head's slice.  Per-head structure is then carried by
    # plain 2-D matmuls: no per-head lane slices, no batched einsums, no reshapes.
    k_blk = jnp.concatenate([k, k, k, k], axis=0) * head_mask        # (WIDE, SIZE)
    v_blk = jnp.concatenate([v, v, v, v], axis=0) * head_mask        # (WIDE, SIZE)

    # Scores for every (head, batch, key-token) wide column in ONE matmul.
    # The precomputed additive bias pushes cross-batch columns to -1e30, so they
    # vanish exactly from the max, the softmax sums and A@V (exp underflows to 0).
    s = jnp.einsum('nf,gf->ng', q, k_blk,
                   preferred_element_type=jnp.float32) + batch_bias  # (TOK, WIDE)
    # Row max is a per-row constant -> exact per-head stabilization (shift invariance).
    s = s - jnp.max(s, axis=-1, keepdims=True)
    e = jnp.exp(s)

    # A@V and softmax denominator: two independent MXU pushes off the same `e`.
    # head_mask doubles as the indicator RHS, so the denominator lands already
    # broadcast across each head's 8 feature lanes.
    unnorm = jnp.dot(e, v_blk, preferred_element_type=jnp.float32)     # (TOK, SIZE)
    denom = jnp.dot(e, head_mask, preferred_element_type=jnp.float32)  # (TOK, SIZE)

    # EUP reciprocal fast path + one Newton step (y*(2 - d*y)) to restore f32 accuracy.
    r0 = pl.reciprocal(denom, approx=True)
    recip = r0 * (2.0 - denom * r0)

    o = q + unnorm * recip                                            # (TOK, SIZE)

    fc = jnp.dot(o, wo, preferred_element_type=jnp.float32) + bo
    out_ref[...] = o + jnp.maximum(fc, 0.0)


def pack_sab_params(wq, bq, wk, bk, wv, bv, wo, bo):
    """One-time, host-side parameter fusion + mask precomputation (off the forward path).

    - folds the 1/sqrt(SIZE) score scale into the K projection (K only feeds the
      scores; Q also feeds the residual so it stays unscaled),
    - fuses W_q/W_k/W_v and their biases into one (40, 96) slab,
    - packs W_o, b_o and the head-block mask into one (104, 32) slab,
    - builds the cross-batch additive bias (16, 64).
    """
    scale = 1.0 / math.sqrt(SIZE)   # torch scales by sqrt(size), not sqrt(head_size)
    wq, bq, wk, bk, wv, bv, wo, bo = map(np.asarray, (wq, bq, wk, bk, wv, bv, wo, bo))

    qkv_slab = np.zeros((_QKV_SLAB_ROWS, 3 * SIZE), np.float32)
    qkv_slab[0:D_IN, 0 * SIZE:1 * SIZE] = wq
    qkv_slab[0:D_IN, 1 * SIZE:2 * SIZE] = wk * scale
    qkv_slab[0:D_IN, 2 * SIZE:3 * SIZE] = wv
    qkv_slab[_QKV_B_ROW, 0 * SIZE:1 * SIZE] = bq[0]
    qkv_slab[_QKV_B_ROW, 1 * SIZE:2 * SIZE] = bk[0] * scale
    qkv_slab[_QKV_B_ROW, 2 * SIZE:3 * SIZE] = bv[0]

    g = np.arange(WIDE)   # wide index: head = g // TOK, token-row = g % TOK
    f = np.arange(SIZE)
    head_mask = ((g[:, None] // TOK) == (f[None, :] // HEAD)).astype(np.float32)

    o_slab = np.zeros((_O_SLAB_ROWS, SIZE), np.float32)
    o_slab[0:SIZE, :] = wo
    o_slab[_O_B_ROW, :] = bo[0]
    o_slab[_HEAD_MASK_ROW:_HEAD_MASK_ROW + WIDE, :] = head_mask

    r = np.arange(TOK)
    same_batch = (r[:, None] // N) == ((g[None, :] % TOK) // N)
    batch_bias = np.where(same_batch, 0.0, NEG_INF).astype(np.float32)

    return jnp.asarray(qkv_slab), jnp.asarray(o_slab), jnp.asarray(batch_bias)


def sab_forward(x, qkv_slab, o_slab, batch_bias):
    b, n, d = x.shape
    x2d = x.reshape(b * n, d)                       # all batches in one invocation

    vmem = pl.BlockSpec(memory_space=pltpu.MemorySpace.VMEM)
    out2d = pl.pallas_call(
        sab_kernel,
        out_shape=jax.ShapeDtypeStruct((b * n, SIZE), jnp.float32),
        in_specs=[vmem, vmem, vmem, vmem],
        out_specs=vmem,
    )(x2d, qkv_slab, o_slab, batch_bias)
    return out2d.reshape(b, n, SIZE)


def sab_reference(x, wq, bq, wk, bk, wv, bv, wo, bo):
    """Pure-JAX mirror of the PyTorch MAB.forward (layer_norm=False)."""
    q = x @ wq + bq[0]
    k = x @ wk + bk[0]
    v = x @ wv + bv[0]
    outs = []
    for h in range(N_HEADS):
        sl = slice(h * HEAD, (h + 1) * HEAD)
        qh, kh, vh = q[..., sl], k[..., sl], v[..., sl]
        s = jnp.einsum('bnd,bmd->bnm', qh, kh) / math.sqrt(SIZE)
        a = jax.nn.softmax(s, axis=-1)
        outs.append(qh + jnp.einsum('bnm,bmd->bnd', a, vh))
    o = jnp.concatenate(outs, axis=-1)
    return o + jax.nn.relu(o @ wo + bo[0])


if __name__ == "__main__":
    key = jax.random.PRNGKey(0)
    ks = jax.random.split(key, 9)

    x = jax.random.normal(ks[0], (B, N, D_IN), dtype=jnp.float32)

    # deterministic parameter init (uniform, roughly matching nn.Linear scale)
    def lin_init(kw, kb, fan_in, fan_out):
        bound = 1.0 / math.sqrt(fan_in)
        w = jax.random.uniform(kw, (fan_in, fan_out), jnp.float32, -bound, bound)
        b = jax.random.uniform(kb, (1, fan_out), jnp.float32, -bound, bound)
        return w, b

    wq, bq = lin_init(ks[1], ks[2], D_IN, SIZE)
    wk, bk = lin_init(ks[3], ks[4], D_IN, SIZE)
    wv, bv = lin_init(ks[5], ks[6], D_IN, SIZE)
    wo, bo = lin_init(ks[7], ks[8], SIZE, SIZE)

    # One-time fusion/packing (init-time work, not per forward call).
    qkv_slab, o_slab, batch_bias = pack_sab_params(wq, bq, wk, bk, wv, bv, wo, bo)

    out = sab_forward(x, qkv_slab, o_slab, batch_bias)
    out = jax.block_until_ready(out)

    ref = sab_reference(x, wq, bq, wk, bk, wv, bv, wo, bo)
    assert out.shape == (B, N, SIZE)
    assert jnp.allclose(out, ref, rtol=1e-5, atol=1e-5), "mismatch vs reference"

    print("KERNEL_OK")
</pallas_src>

<mosaic_0001>
module attributes {stable_mosaic.version = 11 : i64} {
  func.func @sab_kernel(%arg0: memref<16x32xf32, #tpu.memory_space<vmem>>, %arg1: memref<40x96xf32, #tpu.memory_space<vmem>>, %arg2: memref<104x32xf32, #tpu.memory_space<vmem>>, %arg3: memref<16x64xf32, #tpu.memory_space<vmem>>, %arg4: memref<16x32xf32, #tpu.memory_space<vmem>>) attributes {dimension_semantics = [], scalar_prefetch = 0 : i64, scratch_operands = 0 : i64, tpu.core_type = #tpu.core_type<tc>} {
    %c0 = arith.constant 0 : index
    %c0_0 = arith.constant 0 : index
    %0 = vector.load %arg0[%c0, %c0_0] : memref<16x32xf32, #tpu.memory_space<vmem>>, vector<16x32xf32>
    %c0_1 = arith.constant 0 : index
    %c0_2 = arith.constant 0 : index
    %1 = vector.load %arg1[%c0_1, %c0_2] : memref<40x96xf32, #tpu.memory_space<vmem>>, vector<32x96xf32>
    %c32 = arith.constant 32 : index
    %c0_3 = arith.constant 0 : index
    %2 = vector.load %arg1[%c32, %c0_3] : memref<40x96xf32, #tpu.memory_space<vmem>>, vector<1x96xf32>
    %c0_4 = arith.constant 0 : index
    %c0_5 = arith.constant 0 : index
    %3 = vector.load %arg2[%c0_4, %c0_5] : memref<104x32xf32, #tpu.memory_space<vmem>>, vector<32x32xf32>
    %c32_6 = arith.constant 32 : index
    %c0_7 = arith.constant 0 : index
    %4 = vector.load %arg2[%c32_6, %c0_7] : memref<104x32xf32, #tpu.memory_space<vmem>>, vector<1x32xf32>
    %c40 = arith.constant 40 : index
    %c0_8 = arith.constant 0 : index
    %5 = vector.load %arg2[%c40, %c0_8] : memref<104x32xf32, #tpu.memory_space<vmem>>, vector<64x32xf32>
    %c0_9 = arith.constant 0 : index
    %c0_10 = arith.constant 0 : index
    %6 = vector.load %arg3[%c0_9, %c0_10] : memref<16x64xf32, #tpu.memory_space<vmem>>, vector<16x64xf32>
    %cst = arith.constant dense<0.000000e+00> : vector<16x96xf32>
    %7 = tpu.matmul %0, %1, %cst {dimension_numbers = #tpu.dot_dimension_numbers<[1], [0], [0], [1], [0, 0, 1, 1], [], []>} : vector<16x32xf32>, vector<32x96xf32>, vector<16x96xf32> -> vector<16x96xf32>
    %8 = vector.broadcast %2 : vector<1x96xf32> to vector<16x96xf32>
    %9 = arith.addf %7, %8 : vector<16x96xf32>
    %10 = vector.extract_strided_slice %9 {offsets = [0, 0], sizes = [16, 32], strides = [1, 1]} : vector<16x96xf32> to vector<16x32xf32>
    %11 = vector.extract_strided_slice %9 {offsets = [0, 32], sizes = [16, 32], strides = [1, 1]} : vector<16x96xf32> to vector<16x32xf32>
    %12 = vector.extract_strided_slice %9 {offsets = [0, 64], sizes = [16, 32], strides = [1, 1]} : vector<16x96xf32> to vector<16x32xf32>
    %13 = tpu.concatenate %11, %11, %11, %11 in 0 : vector<16x32xf32>, vector<16x32xf32>, vector<16x32xf32>, vector<16x32xf32> -> vector<64x32xf32>
    %14 = arith.mulf %13, %5 : vector<64x32xf32>
    %15 = tpu.concatenate %12, %12, %12, %12 in 0 : vector<16x32xf32>, vector<16x32xf32>, vector<16x32xf32>, vector<16x32xf32> -> vector<64x32xf32>
    %16 = arith.mulf %15, %5 : vector<64x32xf32>
    "tpu.trace_start"() <{level = 10 : i32, message = "nf,gf->ng"}> : () -> ()
    %cst_11 = arith.constant dense<0.000000e+00> : vector<16x64xf32>
    %17 = tpu.matmul %10, %14, %cst_11 {dimension_numbers = #tpu.dot_dimension_numbers<[1], [1], [0], [0], [0, 0, 1, 0], [], []>} : vector<16x32xf32>, vector<64x32xf32>, vector<16x64xf32> -> vector<16x64xf32>
    "tpu.trace_stop"() : () -> ()
    %18 = arith.addf %17, %6 : vector<16x64xf32>
    %cst_12 = arith.constant dense<0xFF800000> : vector<16xf32>
    %19 = vector.multi_reduction <maximumf>, %18, %cst_12 [1] : vector<16x64xf32> to vector<16xf32>
    %20 = vector.shape_cast %19 : vector<16xf32> to vector<16x1xf32>
    %21 = vector.broadcast %20 : vector<16x1xf32> to vector<16x64xf32>
    %22 = arith.subf %18, %21 : vector<16x64xf32>
    %23 = math.exp %22 : vector<16x64xf32>
    %cst_13 = arith.constant dense<0.000000e+00> : vector<16x32xf32>
    %24 = tpu.matmul %23, %16, %cst_13 {dimension_numbers = #tpu.dot_dimension_numbers<[1], [0], [0], [1], [0, 0, 1, 1], [], []>} : vector<16x64xf32>, vector<64x32xf32>, vector<16x32xf32> -> vector<16x32xf32>
    %cst_14 = arith.constant dense<0.000000e+00> : vector<16x32xf32>
    %25 = tpu.matmul %23, %5, %cst_14 {dimension_numbers = #tpu.dot_dimension_numbers<[1], [0], [0], [1], [0, 0, 1, 1], [], []>} : vector<16x64xf32>, vector<64x32xf32>, vector<16x32xf32> -> vector<16x32xf32>
    %26 = tpu.reciprocal %25 {approx = true} : vector<16x32xf32> -> vector<16x32xf32>
    %27 = arith.mulf %25, %26 : vector<16x32xf32>
    %cst_15 = arith.constant 2.000000e+00 : f32
    %28 = vector.broadcast %cst_15 : f32 to vector<16x32xf32>
    %29 = arith.subf %28, %27 : vector<16x32xf32>
    %30 = arith.mulf %26, %29 : vector<16x32xf32>
    %31 = arith.mulf %24, %30 : vector<16x32xf32>
    %32 = arith.addf %10, %31 : vector<16x32xf32>
    %cst_16 = arith.constant dense<0.000000e+00> : vector<16x32xf32>
    %33 = tpu.matmul %32, %3, %cst_16 {dimension_numbers = #tpu.dot_dimension_numbers<[1], [0], [0], [1], [0, 0, 1, 1], [], []>} : vector<16x32xf32>, vector<32x32xf32>, vector<16x32xf32> -> vector<16x32xf32>
    %34 = vector.broadcast %4 : vector<1x32xf32> to vector<16x32xf32>
    %35 = arith.addf %33, %34 : vector<16x32xf32>
    %cst_17 = arith.constant 0.000000e+00 : f32
    %36 = vector.broadcast %cst_17 : f32 to vector<16x32xf32>
    %37 = arith.maximumf %35, %36 : vector<16x32xf32>
    %38 = arith.addf %32, %37 : vector<16x32xf32>
    %c0_18 = arith.constant 0 : index
    %c0_19 = arith.constant 0 : index
    %39 = vector.load %arg4[%c0_18, %c0_19] : memref<16x32xf32, #tpu.memory_space<vmem>>, vector<16x32xf32>
    tpu.vector_store %arg4[%c0_18, %c0_19], %38 {strides = array<i32>} : memref<16x32xf32, #tpu.memory_space<vmem>>, vector<16x32xf32>,
    return
  }
}

</mosaic_0001>

<bundles_post_ra>
// kernel: tpu_custom_call.1
= control target key start
LH: loop header
LB: loop body
LE: loop exit
PB: predicated region body
PF: predicated region fallthrough
CT: control target
= control target key end

     0   :  { %vm44_vm0 = vcmask 261120   ;;  %s930_s29 = smov 32   ;;  %s1151_s0 = inlined_call_operand.vmem [shape: f32[16,32], index: 0, kind: input, shape index: {}]   ;;  %s1152_s1 = inlined_call_operand.vmem [shape: f32[40,96], index: 1, kind: input, shape index: {}]   ;;  %s1153_s2 = inlined_call_operand.vmem [shape: f32[104,32], index: 2, kind: input, shape index: {}]   ;;  %s1154_s3 = inlined_call_operand.vmem [shape: f32[16,64], index: 3, kind: input, shape index: {}]   ;;  %s1155_s4 = inlined_call_operand.hbm [shape: f32[16,32], index: 4, kind: output, shape index: {}]  }
   0x1   :  { %v20_v0 = vld [vmem:[%s1152_s1] sm:$0xff]  ;;  %v21_v1 = vld [vmem:[%s1152_s1 + $0x8] sm:$0xff]  ;;  %v22_v2 = vld [vmem:[%s1152_s1 + $0x10] sm:$0xff] }
   0x2   :  { %v780_v3 = vpack.c.bf16 %v21_v1, %v20_v0  ;;  %v23_v4 = vld [vmem:[%s1152_s1 + $0x18] sm:$0xff]  ;;  %v18_v5 = vld [vmem:[%s1151_s0] sm:$0xff]  ;;  %v985_v8 = vld [vmem:[%s1153_s2 + $0x28] sm:$0xff] }
   0x3   :  { %v784_v6 = vpack.c.bf16 %v23_v4, %v22_v2  ;;  %709 = vmatprep.mubr.msk.f32.mxu0 %vm44_vm0, %v18_v5  ;;  %v980_v7 = vld [vmem:[%s1153_s2 + $0x38] sm:$0xff]  ;;  %134 = vrot.lane.b32.xlu0 %v985_v8, %s930_s29  ;;  %v992_v9 = vld [vmem:[%s1153_s2 + $0x40] sm:$0xff] }
   0x4   :  { %781 = vmatprep.subr.bf16.mxu0 %v780_v3  ;;  %138 = vrot.lane.b32.xlu1 %v980_v7, %s930_s29 }
   0x5   :  { %783 = vmatpush3.bf16.msra.mxu0 %v780_v3 }
   0x6   :  { %9 = vsyncpa [#allocation3], 0  ;;  %785 = vmatprep.subr.bf16.mxu0 %v784_v6  ;;  %v997_v10 = vld [vmem:[%s1153_s2 + $0x30] sm:$0xff]  ;;  %v19_v11 = vld [vmem:[%s1151_s0 + $0x8] sm:$0xff]  ;;  %s932_s19 = smov 64   ;;  %vm319_vm2 = vcmask 523264  }
   0x7   :  { %136 = vrot.lane.b32.xlu0 %v997_v10, %s930_s29  ;;  %v1007_v12 = vld [vmem:[%s1153_s2 + $0x50] sm:$0xff]  ;;  %v1012_v13 = vld [vmem:[%s1153_s2 + $0x48] sm:$0xff]  ;;  %v1020_v14 = vld [vmem:[%s1153_s2 + $0x60] sm:$0xff]  ;;  %s933_s7 = smov [#allocation2]  }
   0x8   :  { %140 = vrot.lane.b32.xlu1 %v992_v9, %s930_s29  ;;  %v1025_v15 = vld [vmem:[%s1153_s2 + $0x58] sm:$0xff]  ;;  %v639_v22 = vld [vmem:[%s1152_s1 + $0x20] ss:$0 sm:$0xff]  ;;  %s931_s1 = smov 96   ;;  %vm1064_vm1 = vmpackc.low %vm44_vm0, %vm44_vm0  ;;  %s628_s8 = sshll.u32 %s933_s7, 4  ;;  %s629_s8 = int_to_ptr.vmem [resolvable:$true] %s628_s8 }
   0x9   :  { %787 = vmatpush3.bf16.msra.mxu0 %v784_v6  ;;  %s906_s9 = scalar_lea.vmem %s629_s8, 256  ;;  %p911_p1 = scmp.lt.s32.totalorder %s629_s8, %s629_s8 }
   0xa   :  { %p907_p0 = scmp.ne.s32.totalorder %s629_s8, %s906_s9  ;;  %p912_p2 = scmp.lt.s32.totalorder %s906_s9, %s906_s9 }
   0xb   :  { %142 = vrot.lane.b32.xlu0 %v1012_v13, %s930_s29 }
   0xc   :  { %710 = vmatmul.mubr.msk.f32.vlgmr.msra.gmra.mrb[0].mxu0 %vm44_vm0, %v19_v11  ;;  %144 = vrot.lane.b32.xlu1 %v1007_v12, %s930_s29  ;;  %p913_p3 = por %p912_p2, %p911_p1 }
   0xe   :  { %p914_p4 = pnand %p913_p3, %p907_p0 }
   0xf   :  { %146 = vrot.lane.b32.xlu0 %v1025_v15, %s930_s29 }
  0x10   :  { %148 = vrot.lane.b32.xlu1 %v1020_v14, %s930_s29 }
  0x75   :  { %v135_v17 = vpop.permute.xlu0 %134 }
  0x76   :  { %v139_v16 = vpop.permute.xlu1 %138 }
  0x79   :  { %v137_v19 = vpop.permute.xlu0 %136 }
  0x7a   :  { %v141_v18 = vpop.permute.xlu1 %140 }
  0x7d   :  { %v143_v21 = vpop.permute.xlu0 %142 }
  0x7e   :  { %v145_v20 = vpop.permute.xlu1 %144 }
  0x81   :  { %v147_v28 = vpop.permute.xlu0 %146 }
  0x82   :  { %v149_v27 = vpop.permute.xlu1 %148 }
  0xdf   :  { %v711_v23 = vpop.f32.mrb[0].mxu0 }
  0xe0   :  { %v1032_v24 = vadd.f32 %v711_v23, %v639_v22  ;;  %v117_v25 = vpop.f32.mrb[1].mxu0 }
  0xe1   :  { %v1034_v26 = vadd.f32 %v639_v22, %v117_v25 }
  0xe2   :  { %v161_v29 = vmul.f32 %v141_v18, %v1032_v24  ;;  %v159_v30 = vmul.f32 %v137_v19, %v1032_v24  ;;  %v165_v33 = vmul.f32 %v149_v27, %v1032_v24  ;;  %v163_v34 = vmul.f32 %v145_v20, %v1032_v24 }
  0xe3   :  { %728 = vmatprep.mubr.msk.f32.mxu1 %vm44_vm0, %v1034_v26  ;;  %v160_v31 = vmul.f32 %v139_v16, %v1034_v26  ;;  %v158_v32 = vmul.f32 %v135_v17, %v1034_v26  ;;  %v164_v35 = vmul.f32 %v147_v28, %v1034_v26  ;;  %v162_v38 = vmul.f32 %v143_v21, %v1034_v26 }
  0xe5   :  { %v863_v36 = vpack.i.bf16 %v161_v29, %v160_v31  ;;  %v858_v37 = vpack.i.bf16 %v159_v30, %v158_v32  ;;  %v873_v39 = vpack.i.bf16 %v165_v33, %v164_v35  ;;  %v868_v40 = vpack.i.bf16 %v163_v34, %v162_v38  ;;  %v39_v29 = vld [vmem:[%s1154_s3 + $0x8] sm:$0xff]  ;;  %v38_v30 = vld [vmem:[%s1154_s3] sm:$0xff] }
  0xe7   :  { %864 = vrot.lane.b32.xlu1 %v863_v36, %s931_s1  ;;  %859 = vrot.lane.b32.xlu0 %v858_v37, %s931_s1 }
  0xeb   :  { %874 = vrot.lane.b32.xlu1 %v873_v39, %s931_s1  ;;  %869 = vrot.lane.b32.xlu0 %v868_v40, %s931_s1 }
  0xef   :  { %168 = vrot.lane.b32.xlu1 %v997_v10, %s932_s19  ;;  %166 = vrot.lane.b32.xlu0 %v985_v8, %s932_s19 }
  0xf3   :  { %172 = vrot.lane.b32.xlu1 %v992_v9, %s932_s19  ;;  %170 = vrot.lane.b32.xlu0 %v980_v7, %s932_s19 }
  0xf7   :  { %176 = vrot.lane.b32.xlu1 %v1007_v12, %s932_s19  ;;  %174 = vrot.lane.b32.xlu0 %v1012_v13, %s932_s19 }
  0xfb   :  { %180 = vrot.lane.b32.xlu1 %v1020_v14, %s932_s19  ;;  %178 = vrot.lane.b32.xlu0 %v1025_v15, %s932_s19 }
 0x159   :  { %v865_v41 = vpop.permute.xlu1 %864  ;;  %v860_v42 = vpop.permute.xlu0 %859 }
 0x15a   :  { %v867_v43 = vunpack.i.h.bf16 %v865_v41  ;;  %v866_v44 = vunpack.i.l.bf16 %v865_v41  ;;  %v862_v45 = vunpack.i.h.bf16 %v860_v42  ;;  %v861_v46 = vunpack.i.l.bf16 %v860_v42 }
 0x15c   :  { %v788_v48 = vpack.c.bf16 %v862_v45, %v861_v46  ;;  %v794_v51 = vpack.c.bf16 %v867_v43, %v866_v44 }
 0x15d   :  { %v875_v49 = vpop.permute.xlu1 %874  ;;  %v870_v50 = vpop.permute.xlu0 %869 }
 0x15e   :  { %790 = vmatprep.subr.msk.bf16.mxu1 %vm1064_vm1, %v788_v48  ;;  %v872_v54 = vunpack.i.h.bf16 %v870_v50  ;;  %v871_v55 = vunpack.i.l.bf16 %v870_v50  ;;  %v877_v3 = vunpack.i.h.bf16 %v875_v49  ;;  %v876_v4 = vunpack.i.l.bf16 %v875_v49 }
 0x15f   :  { %793 = vmatpush3.bf16.xpose.msk.msra.mxu1 %vm1064_vm1, %v788_v48 }
 0x160   :  { %796 = vmatprep.subr.msk.bf16.mxu1 %vm1064_vm1, %v794_v51  ;;  %v800_v61 = vpack.c.bf16 %v872_v54, %v871_v55  ;;  %v806_v16 = vpack.c.bf16 %v877_v3, %v876_v4  ;;  %v828_v54 = vpack.c.bf16 %v997_v10, %v985_v8  ;;  %v840_v8 = vpack.c.bf16 %v1020_v14, %v1025_v15 }
 0x161   :  { %v169_v52 = vpop.permute.xlu1 %168  ;;  %v167_v53 = vpop.permute.xlu0 %166 }
 0x162   :  { %v191_v56 = vmul.f32 %v169_v52, %v1032_v24  ;;  %v190_v57 = vmul.f32 %v167_v53, %v1034_v26 }
 0x164   :  { %v878_v58 = vpack.i.bf16 %v191_v56, %v190_v57  ;;  %v832_v56 = vpack.c.bf16 %v992_v9, %v980_v7  ;;  %v25_v7 = vld [vmem:[%s1153_s2] sm:$0xff]  ;;  %v26_v9 = vld [vmem:[%s1153_s2 + $0x8] sm:$0xff] }
 0x165   :  { %v173_v59 = vpop.permute.xlu1 %172  ;;  %v171_v60 = vpop.permute.xlu0 %170  ;;  %v844_v10 = vpack.c.bf16 %v26_v9, %v25_v7 }
 0x166   :  { %v193_v62 = vmul.f32 %v173_v59, %v1032_v24  ;;  %v192_v63 = vmul.f32 %v171_v60, %v1034_v26  ;;  %879 = vrot.lane.b32.xlu0 %v878_v58, %s932_s19  ;;  %v836_v58 = vpack.c.bf16 %v1007_v12, %v1012_v13  ;;  %v27_v12 = vld [vmem:[%s1153_s2 + $0x10] sm:$0xff]  ;;  %v28_v13 = vld [vmem:[%s1153_s2 + $0x18] sm:$0xff] }
 0x167   :  { %799 = vmatpush3.bf16.xpose.msk.msra.mxu1 %vm1064_vm1, %v794_v51  ;;  %v848_v14 = vpack.c.bf16 %v28_v13, %v27_v12 }
 0x168   :  { %v883_v0 = vpack.i.bf16 %v193_v62, %v192_v63  ;;  %802 = vmatprep.subr.msk.bf16.mxu1 %vm1064_vm1, %v800_v61 }
 0x169   :  { %v177_v1 = vpop.permute.xlu1 %176  ;;  %v175_v2 = vpop.permute.xlu0 %174 }
 0x16a   :  { %v195_v5 = vmul.f32 %v177_v1, %v1032_v24  ;;  %v194_v6 = vmul.f32 %v175_v2, %v1034_v26  ;;  %884 = vrot.lane.b32.xlu1 %v883_v0, %s932_s19 }
 0x16c   :  { %v888_v11 = vpack.i.bf16 %v195_v5, %v194_v6 }
 0x16d   :  { %v179_v17 = vpop.permute.xlu0 %178  ;;  %v181_v18 = vpop.permute.xlu1 %180 }
 0x16e   :  { %v197_v37 = vmul.f32 %v181_v18, %v1032_v24  ;;  %v196_v38 = vmul.f32 %v179_v17, %v1034_v26  ;;  %v656_v18 = vld [vmem:[%s1153_s2 + $0x20] ss:$0 sm:$0xff] }
 0x16f   :  { %805 = vmatpush3.bf16.xpose.msk.msra.mxu1 %vm1064_vm1, %v800_v61 }
 0x170   :  { %808 = vmatprep.subr.msk.bf16.mxu1 %vm1064_vm1, %v806_v16  ;;  %v893_v39 = vpack.i.bf16 %v197_v37, %v196_v38 }
 0x177   :  { %811 = vmatpush3.bf16.xpose.msk.msra.mxu1 %vm1064_vm1, %v806_v16 }
 0x178   :  { %845 = vmatprep.subr.bf16.mxu1 %v844_v10 }
 0x17e   :  { %729 = vmatmul.mubr.msk.f32.vlgmr.msra.gmra.mrb[0].mxu1 %vm44_vm0, %v1032_v24 }
 0x17f   :  { %847 = vmatpush3.bf16.msra.mxu1 %v844_v10 }
 0x180   :  { %849 = vmatprep.subr.bf16.mxu1 %v848_v14 }
 0x183   :  { %851 = vmatpush3.bf16.msra.mxu1 %v848_v14 }
 0x1d8   :  { %v880_v19 = vpop.permute.xlu0 %879 }
 0x1d9   :  { %v882_v20 = vunpack.i.h.bf16 %v880_v19  ;;  %v881_v21 = vunpack.i.l.bf16 %v880_v19 }
 0x1db   :  { %v812_v22 = vpack.c.bf16 %v882_v20, %v881_v21 }
 0x1dc   :  { %v885_v23 = vpop.permute.xlu1 %884 }
 0x1dd   :  { %v887_v25 = vunpack.i.h.bf16 %v885_v23  ;;  %v886_v27 = vunpack.i.l.bf16 %v885_v23  ;;  %813 = vmatprep.subr.bf16.mxu0 %v812_v22 }
 0x1de   :  { %815 = vmatpush3.bf16.msra.mxu0 %v812_v22 }
 0x1df   :  { %v816_v28 = vpack.c.bf16 %v887_v25, %v886_v27 }
 0x1e1   :  { %817 = vmatprep.subr.bf16.mxu0 %v816_v28 }
 0x1e2   :  { %819 = vmatpush3.bf16.msra.mxu0 %v816_v28 }
 0x251   :  { %v730_v31 = vpop.f32.mrb[0].mxu1 }
 0x252   :  { %v316_v32 = vadd.f32 %v730_v31, %v39_v29  ;;  %v310_v33 = vpop.f32.mrb[1].mxu1 }
 0x253   :  { %v311_v34 = vadd.f32 %v310_v33, %v38_v30 }
 0x254   :  { %v323_v35 = vsel %vm319_vm2, %v316_v32, -inf }
 0x255   :  { %324 = vmax.xlane.f32.xlu1 %v323_v35  ;;  %v320_v36 = vsel %vm319_vm2, %v311_v34, -inf }
 0x256   :  { %321 = vmax.xlane.f32.xlu0 %v320_v36 }
 0x266   :  { %894 = vrot.lane.b32.xlu1 %v893_v39, %s932_s19 }
 0x26c   :  { %889 = vrot.lane.b32.xlu0 %v888_v11, %s932_s19 }
 0x2e2   :  { %v325_v40 = vpop.xlane.xlu1 %324 }
 0x2e3   :  { %v327_v41 = vsub.f32 %v316_v32, %v325_v40  ;;  %v322_v42 = vpop.xlane.xlu0 %321 }
 0x2e4   :  { %v326_v43 = vsub.f32 %v311_v34, %v322_v42 }
 0x2e5   :  { %v330_v44 = vmul.f32 1.442695, %v327_v41 }
 0x2e6   :  { %v328_v45 = vmul.f32 1.442695, %v326_v43  ;;  %v895_v46 = vpop.permute.xlu1 %894 }
 0x2e7   :  { %v897_v47 = vunpack.i.h.bf16 %v895_v46  ;;  %v890_v48 = vpop.permute.xlu0 %889  ;;  %v896_v49 = vunpack.i.l.bf16 %v895_v46 }
 0x2e8   :  { %898 = vpow2.f32 %v328_v45  ;;  %v892_v50 = vunpack.i.h.bf16 %v890_v48  ;;  %v891_v51 = vunpack.i.l.bf16 %v890_v48 }
 0x2e9   :  { %900 = vpow2.f32 %v330_v44  ;;  %v824_v53 = vpack.c.bf16 %v897_v47, %v896_v49 }
 0x2ea   :  { %v820_v52 = vpack.c.bf16 %v892_v50, %v891_v51 }
 0x2ec   :  { %821 = vmatprep.subr.bf16.mxu0 %v820_v52 }
 0x2ed   :  { %823 = vmatpush3.bf16.msra.mxu0 %v820_v52 }
 0x2ee   :  { %825 = vmatprep.subr.bf16.mxu0 %v824_v53 }
 0x2f1   :  { %827 = vmatpush3.bf16.msra.mxu0 %v824_v53 }
 0x2f2   :  { %v899_v55 = vpop.eup %898  ;;  %829 = vmatprep.subr.bf16.mxu0 %v828_v54 }
 0x2f3   :  { %v901_v57 = vpop.eup %900  ;;  %747 = vmatprep.mubr.msk.f32.mxu0 %vm319_vm2, %v899_v55 }
 0x2f4   :  { %748 = vmatmul.mubr.msk.f32.vlgmr.msra.gmra.mrb[2].mxu0 %vm319_vm2, %v901_v57 }
 0x2f5   :  { %831 = vmatpush3.bf16.msra.mxu0 %v828_v54  ;;  %766 = vmatprep.mubr.msk.f32.mxu0 %vm319_vm2, %v899_v55 }
 0x2f6   :  { %833 = vmatprep.subr.bf16.mxu0 %v832_v56 }
 0x2f9   :  { %835 = vmatpush3.bf16.msra.mxu0 %v832_v56 }
 0x2fa   :  { %837 = vmatprep.subr.bf16.mxu0 %v836_v58 }
 0x2fd   :  { %839 = vmatpush3.bf16.msra.mxu0 %v836_v58 }
 0x2fe   :  { %841 = vmatprep.subr.bf16.mxu0 %v840_v8 }
 0x301   :  { %843 = vmatpush3.bf16.msra.mxu0 %v840_v8 }
 0x304   :  { %767 = vmatmul.mubr.msk.f32.vlgmr.msra.gmra.mrb[4].mxu0 %vm319_vm2, %v901_v57 }
 0x3c7   :  { %v749_v15 = vpop.f32.mrb[2].mxu0 }
 0x3c8   :  { %v436_v59 = vpop.f32.mrb[3].mxu0 }
 0x3d7   :  { %v768_v60 = vpop.f32.mrb[4].mxu0 }
 0x3d8   :  { %902 = vrcp.f32 %v768_v60  ;;  %v511_v61 = vpop.f32.mrb[5].mxu0 }
 0x3d9   :  { %904 = vrcp.f32 %v511_v61 }
 0x3e2   :  { %v903_v62 = vpop.eup %902 }
 0x3e3   :  { %v905_v63 = vpop.eup %904  ;;  %v523_v0 = vmul.f32 %v903_v62, %v768_v60 }
 0x3e4   :  { %v522_v1 = vmul.f32 %v905_v63, %v511_v61 }
 0x3e5   :  { %v525_v2 = vsub.f32 2.0, %v523_v0 }
 0x3e6   :  { %v524_v3 = vsub.f32 2.0, %v522_v1 }
 0x3e7   :  { %v527_v4 = vmul.f32 %v903_v62, %v525_v2 }
 0x3e8   :  { %v526_v5 = vmul.f32 %v905_v63, %v524_v3 }
 0x3e9   :  { %v529_v6 = vmul.f32 %v749_v15, %v527_v4 }
 0x3ea   :  { %v528_v11 = vmul.f32 %v526_v5, %v436_v59 }
 0x3eb   :  { %v531_v17 = vadd.f32 %v529_v6, %v1032_v24 }
 0x3ec   :  { %v530_v16 = vadd.f32 %v528_v11, %v1034_v26 }
 0x3ee   :  { %777 = vmatprep.mubr.msk.f32.mxu1 %vm44_vm0, %v530_v16 }
 0x3ef   :  { %778 = vmatmul.mubr.msk.f32.vlgmr.msra.gmra.mrb[2].mxu1 %vm44_vm0, %v531_v17 }
 0x4c2   :  { %v779_v19 = vpop.f32.mrb[2].mxu1 }
 0x4c3   :  { %v614_v20 = vadd.f32 %v779_v19, %v656_v18  ;;  %v608_v21 = vpop.f32.mrb[3].mxu1 }
 0x4c4   :  { %v609_v22 = vadd.f32 %v656_v18, %v608_v21 }
 0x4c5   :  { %v618_v23 = vmax.f32 %v614_v20, 0.0 }
 0x4c6   :  { %v617_v25 = vmax.f32 %v609_v22, 0.0 }
 0x4c7   :  { %v620_v27 = vadd.f32 %v618_v23, %v531_v17 }
 0x4c8   :  { %v619_v26 = vadd.f32 %v617_v25, %v530_v16 }
 0x4c9   :  { %622 = vst.msk [vmem:[#allocation2 + $0x8] sm:$0xff] %vm44_vm0, %v620_v27 }
 0x4ca   :  { %621 = vst.msk [vmem:[#allocation2] sm:$0xff] %vm44_vm0, %v619_v26 }
 0x4cb   :  { %917 = shalt.err (!%p914_p4)
}
 0x4cc   :  { %s918_s11 = scalar_lea.hbm %s1155_s4, 256 }
 0x4cd   :  { %p919_p5 = scmp.ne.s32.totalorder %s1155_s4, %s918_s11  ;;  %p922_p6 = scmp.lt.u32.totalorder %s918_s11, %s1155_s4 }
 0x4cf   :  { %p924_p7 = pnand %p922_p6, %p919_p5 }
 0x4d1   :  { %927 = shalt.err (!%p924_p7)
}
 0x4d2   :  { %s934_s15 = smov 128   ;;  %s935_s16 = smov 8  }
 0x4d3   :  { %634 = dma.vmem_to_hbm [thread:$0]  %s629_s8, 256, %s1155_s4, [#allocation3], %s934_s15, %s934_s15, %s935_s16  }
 0x4d4   :  { %928 = dma.done.wait [#allocation3], 256  }
 0x4d5   :  { %929 = vsyncadd [#allocation3], 4294967040 }
 0x4d6   :  { %638 = vsyncpa [#allocation3], 1 }

</bundles_post_ra>
